<compile_context>
chip_gen: v6e
topology: v6e:2x2x1
jax: 0.10.0
libtpu: 0.0.40
codegen_flags: <defaults>
</compile_context>

<pallas_src>
import functools
import math

import jax
import jax.numpy as jnp
from jax import lax
from jax.experimental import pallas as pl
from jax.experimental.pallas import tpu as pltpu


# --------------------------------------------------------------------------
# Pallas kernel: one block of s_blk MC samples (flattened to F = s_blk*B rows)
# per grid step; emits the (1, F) per-(slot, example) log-InfoNCE row.
# --------------------------------------------------------------------------
def _mcinfonce_kernel(x_ref, posf_ref, othadd_ref, out_ref, *, sqrt_kappa, log_batch):
    # (F, D) f32: s_blk MC samples of the whole batch, flattened.
    # Fold sqrt(kappa_pos) into the SINGLE shared operand: F*D multiplies
    # instead of F*F, and sims stays bitwise symmetric (both operands are the
    # identical scaled array), which the axis-0 reductions below rely on.
    x = x_ref[0] * sqrt_kappa

    # similarities = kappa_pos * x @ x^T  -> (F, F), via one MXU matmul.
    sims = lax.dot_general(
        x, x, (((1,), (1,)), ((), ())), preferred_element_type=jnp.float32
    )

    pos_f = posf_ref[...]      # 1.0 at the partner entry (same pair, off-diag), else 0.0
    oth_add = othadd_ref[...]  # 0.0 at valid contrast entries (same MC sample, off-diag), -inf else

    # Positive term: exactly one partner per row -> masked sum, no logsumexp.
    # sims and the masks are symmetric, so reduce over axis 0 to land directly
    # in a lane-dense (1, F) row vector.
    pos_val = jnp.sum(sims * pos_f, axis=0, keepdims=True)            # (1, F)

    # Contrast term: masked logsumexp over all off-diagonal, same-sample entries.
    # TODO(synk): exp runs over all F columns although only B are live per row;
    # a lane-dense (B, F) packing would cut EUP work ~F/B (see header note).
    masked = sims + oth_add
    m_row = jnp.max(masked, axis=0, keepdims=True)                    # (1, F), finite (B >= 2)
    ssum = jnp.sum(jnp.exp(masked - m_row), axis=0, keepdims=True)    # (1, F)
    oth_lse = m_row + jnp.log(ssum)                                   # (1, F)

    # log InfoNCE per (MC-sample slot, example), lane-dense (1, F) row.
    out_ref[0] = pos_val - oth_lse + log_batch


def _choose_s_block(S, B, max_rows=128):
    """Largest divisor d of S with F = d*B <= max_rows, preferring F % 128 == 0.

    F a multiple of 128 gives unmasked, lane-dense stores; F is kept small
    (<= 128 by default) because only B of each row's F columns are real
    contrast entries, so exp/VALU work scales linearly with F.
    """
    best_aligned, best_any = None, 1
    for d in range(1, S + 1):
        if S % d == 0 and d * B <= max_rows:
            best_any = d
            if (d * B) % 128 == 0:
                best_aligned = d
    return best_aligned if best_aligned is not None else best_any


def _build_masks(s_blk, B):
    """Constant (F, F) masks for the flattened (slot, example) index r = slot*B + i."""
    F = s_blk * B
    idx = jnp.arange(F, dtype=jnp.int32)
    row = idx[:, None]
    col = idx[None, :]
    off_diag = row != col
    same_sample = (row // B) == (col // B)
    # targets = arange(B//2).repeat_interleave(2)  =>  partner of i is i ^ 1.
    # With B even, (r//2 == c//2) never matches across MC-sample blocks.
    pos = jnp.logical_and((row // 2) == (col // 2), off_diag)
    oth = jnp.logical_and(same_sample, off_diag)
    pos_f = pos.astype(jnp.float32)
    oth_add = jnp.where(oth, jnp.float32(0.0), jnp.float32(-jnp.inf))
    return pos_f, oth_add


def mcinfonce_pallas(samples, *, kappa_pos, num_mc_samples):
    samples = samples.astype(jnp.float32)
    S, B, D = samples.shape
    if num_mc_samples != S:
        raise ValueError(
            f"num_mc_samples ({num_mc_samples}) must equal samples.shape[0] ({S})."
        )
    if kappa_pos < 0:
        raise ValueError("kappa_pos must be non-negative (vMF concentration).")
    s_blk = _choose_s_block(S, B)
    G = S // s_blk
    F = s_blk * B

    # Flatten (S, B, D) -> (G, F, D) outside the kernel (free, contiguous merge).
    x = samples.reshape(G, F, D)
    pos_f, oth_add = _build_masks(s_blk, B)

    kernel = functools.partial(
        _mcinfonce_kernel,
        sqrt_kappa=float(math.sqrt(kappa_pos)),
        log_batch=float(math.log(B)),
    )

    # Output: one lane-dense (1, F) row per grid step.  The grid axis carries
    # no cross-step state, so it is "parallel" (v7x can split it over 2 TCs).
    per_step = pl.pallas_call(
        kernel,
        out_shape=jax.ShapeDtypeStruct((G, 1, F), jnp.float32),
        grid_spec=pltpu.PrefetchScalarGridSpec(
            num_scalar_prefetch=0,
            grid=(G,),
            in_specs=[
                # One block of s_blk MC samples per step.
                pl.BlockSpec((1, F, D), lambda g: (g, 0, 0)),
                # Constant masks: block index never changes -> DMA'd once, VMEM-resident.
                pl.BlockSpec((F, F), lambda g: (0, 0)),
                pl.BlockSpec((F, F), lambda g: (0, 0)),
            ],
            out_specs=pl.BlockSpec((1, 1, F), lambda g: (g, 0, 0)),
        ),
        compiler_params=pltpu.CompilerParams(dimension_semantics=("parallel",)),
    )(x, pos_f, oth_add)

    # Tiny JAX epilogue: logsumexp over all MC samples per example, normalize
    # by num_mc, average, negate.  per_step[g, 0, slot*B + i] corresponds to
    # MC sample g*s_blk + slot and example i, so a plain reshape aligns slots.
    per_slot = per_step.reshape(S, B)
    per_example = jax.scipy.special.logsumexp(per_slot, axis=0) - jnp.log(
        jnp.float32(num_mc_samples)
    )
    return -jnp.mean(per_example)


# --------------------------------------------------------------------------
# Glue (plain JAX): normalization + reparameterized vMF sampling (Wood 1994).
# --------------------------------------------------------------------------
def _l2_normalize(x, eps=1e-12):
    norm = jnp.linalg.norm(x, axis=-1, keepdims=True)
    return x / jnp.maximum(norm, eps)


def _vmf_rsample(key, mu, kappa, num_samples, n_rej=20):
    """Reparameterized von Mises-Fisher samples. mu: (B, D) unit; kappa: (B,) or (B,1)."""
    B, D = mu.shape
    S = num_samples
    kappa = jnp.reshape(kappa, (B,)).astype(jnp.float32)
    k = jnp.broadcast_to(kappa, (S, B))

    m = D
    sqrt_term = jnp.sqrt(4.0 * k**2 + (m - 1) ** 2)
    b = (-2.0 * k + sqrt_term) / (m - 1)
    a = ((m - 1) + 2.0 * k + sqrt_term) / 4.0
    dd = 4.0 * a * b / (1.0 + b) - (m - 1) * jnp.log(jnp.float32(m - 1))

    key_w, key_v = jax.random.split(key)

    # TODO(synk): true vMF rejection sampling loops until acceptance (data-dependent);
    # here we cap at n_rej rounds and keep the first accepted proposal (accept rate is high).
    def body(_, carry):
        w, accepted, kk = carry
        kk, k1, k2 = jax.random.split(kk, 3)
        eps = jax.random.beta(k1, (m - 1) / 2.0, (m - 1) / 2.0, shape=(S, B))
        u = jax.random.uniform(k2, shape=(S, B))
        w_prop = (1.0 - (1.0 + b) * eps) / (1.0 - (1.0 - b) * eps)
        t = 2.0 * a * b / (1.0 - (1.0 - b) * eps)
        accept = ((m - 1) * jnp.log(t) - t + dd) >= jnp.log(u)
        take = jnp.logical_and(accept, jnp.logical_not(accepted))
        w = jnp.where(take, w_prop, w)
        accepted = jnp.logical_or(accepted, accept)
        return w, accepted, kk

    w0 = jnp.zeros((S, B), dtype=jnp.float32)
    acc0 = jnp.zeros((S, B), dtype=bool)
    w, _, _ = lax.fori_loop(0, n_rej, body, (w0, acc0, key_w))

    # tangential direction, uniform on the (D-1)-sphere
    v = jax.random.normal(key_v, (S, B, D - 1), dtype=jnp.float32)
    v = _l2_normalize(v)
    w_ = w[..., None]
    z = jnp.concatenate(
        [w_, jnp.sqrt(jnp.clip(1.0 - w_**2, 0.0, None)) * v], axis=-1
    )  # (S, B, D), vMF around e1

    # Householder reflection mapping e1 -> mu
    e1 = jnp.zeros((D,), jnp.float32).at[0].set(1.0)
    u_h = e1[None, :] - mu
    u_h = u_h / jnp.maximum(jnp.linalg.norm(u_h, axis=-1, keepdims=True), 1e-12)
    zu = jnp.einsum("sbd,bd->sb", z, u_h)
    return z - 2.0 * zu[..., None] * u_h[None, :, :]  # (S, B, D)


class MCInfoNCELoss:
    def __init__(self, kappa_pos, num_mc_samples):
        self.kappa_pos = float(kappa_pos)
        self.num_mc_samples = int(num_mc_samples)

    def __call__(self, prediction_tuple, targets, *, key):
        if targets.shape[0] % 2 != 0:
            raise ValueError("Batch size must be even.")
        features, batch_kappas = prediction_tuple
        batch_mus = _l2_normalize(features)
        samples = _vmf_rsample(key, batch_mus, batch_kappas, self.num_mc_samples)
        return mcinfonce_pallas(
            samples, kappa_pos=self.kappa_pos, num_mc_samples=self.num_mc_samples
        )


# --------------------------------------------------------------------------
# Pure-JAX reference for the in-kernel math (operates on the same samples).
# --------------------------------------------------------------------------
def _ref_loss(samples, kappa_pos, num_mc):
    S, B, D = samples.shape
    sims = kappa_pos * jnp.einsum("sbd,scd->sbc", samples, samples)
    tgt = jnp.repeat(jnp.arange(B // 2), 2)
    same = tgt[:, None] == tgt[None, :]
    eye = jnp.eye(B, dtype=bool)
    pos = jnp.logical_and(same, ~eye)
    oth = ~eye
    pos_lse = jax.scipy.special.logsumexp(jnp.where(pos, sims, -jnp.inf), axis=-1)
    oth_lse = jax.scipy.special.logsumexp(jnp.where(oth, sims, -jnp.inf), axis=-1)
    per_s = pos_lse - (oth_lse - jnp.log(jnp.float32(B)))
    per_e = jax.scipy.special.logsumexp(per_s, axis=0) - jnp.log(jnp.float32(num_mc))
    return -jnp.mean(per_e)


if __name__ == "__main__":
    B, D, S = 8, 32, 16
    key = jax.random.PRNGKey(0)
    kf, kk, ks = jax.random.split(key, 3)

    features = jax.random.normal(kf, (B, D), dtype=jnp.float32)
    kappas = 10.0 + 40.0 * jax.random.uniform(kk, (B, 1), dtype=jnp.float32)
    targets = jnp.zeros((B,), dtype=jnp.int32)  # only its (even) batch size is used

    loss_mod = MCInfoNCELoss(kappa_pos=20.0, num_mc_samples=S)
    loss = loss_mod((features, kappas), targets, key=ks)
    loss = jax.block_until_ready(loss)

    # cross-check the Pallas kernel against a pure-JAX reference on identical samples
    mus = _l2_normalize(features)
    samples = _vmf_rsample(ks, mus, kappas, S)
    ref = jax.block_until_ready(_ref_loss(samples, 20.0, S))

    assert jnp.isfinite(loss), "loss is not finite"
    assert jnp.allclose(loss, ref, rtol=1e-4, atol=1e-4), (loss, ref)
    print("KERNEL_OK")
</pallas_src>

<mosaic_0001>
module attributes {stable_mosaic.version = 11 : i64} {
  func.func @_mcinfonce_kernel(%arg0: i32, %arg1: memref<1x128x32xf32, #tpu.memory_space<vmem>>, %arg2: memref<128x128xf32, #tpu.memory_space<vmem>>, %arg3: memref<128x128xf32, #tpu.memory_space<vmem>>, %arg4: memref<1x1x128xf32, #tpu.memory_space<vmem>>) attributes {dimension_semantics = [#tpu.dimension_semantics<parallel>], iteration_bounds = array<i64: 1>, scalar_prefetch = 0 : i64, scratch_operands = 0 : i64, tpu.core_type = #tpu.core_type<tc>, window_params = [{transform_indices = @transform_0, window_bounds = array<i64: 1, 128, 32>}, {pipeline_mode = #tpu.pipeline_mode<synchronous>, transform_indices = @transform_1, window_bounds = array<i64: 128, 128>}, {pipeline_mode = #tpu.pipeline_mode<synchronous>, transform_indices = @transform_2, window_bounds = array<i64: 128, 128>}, {transform_indices = @transform_3, window_bounds = array<i64: 1, 1, 128>}]} {
    %c0 = arith.constant 0 : index
    %c0_0 = arith.constant 0 : index
    %c0_1 = arith.constant 0 : index
    %0 = vector.load %arg1[%c0, %c0_0, %c0_1] : memref<1x128x32xf32, #tpu.memory_space<vmem>>, vector<1x128x32xf32>
    %1 = vector.shape_cast %0 : vector<1x128x32xf32> to vector<128x32xf32>
    %cst = arith.constant 4.47213602 : f32
    %2 = vector.broadcast %cst : f32 to vector<128x32xf32>
    %3 = arith.mulf %1, %2 : vector<128x32xf32>
    %cst_2 = arith.constant dense<0.000000e+00> : vector<128x128xf32>
    %4 = tpu.matmul %3, %3, %cst_2 {dimension_numbers = #tpu.dot_dimension_numbers<[1], [1], [0], [0], [0, 0, 1, 0], [], []>} : vector<128x32xf32>, vector<128x32xf32>, vector<128x128xf32> -> vector<128x128xf32>
    %c0_3 = arith.constant 0 : index
    %c0_4 = arith.constant 0 : index
    %5 = vector.load %arg2[%c0_3, %c0_4] : memref<128x128xf32, #tpu.memory_space<vmem>>, vector<128x128xf32>
    %c0_5 = arith.constant 0 : index
    %c0_6 = arith.constant 0 : index
    %6 = vector.load %arg3[%c0_5, %c0_6] : memref<128x128xf32, #tpu.memory_space<vmem>>, vector<128x128xf32>
    %7 = arith.mulf %4, %5 : vector<128x128xf32>
    %cst_7 = arith.constant dense<0.000000e+00> : vector<128xf32>
    %8 = vector.multi_reduction <add>, %7, %cst_7 [0] : vector<128x128xf32> to vector<128xf32>
    %9 = vector.shape_cast %8 : vector<128xf32> to vector<1x128xf32>
    %10 = arith.addf %4, %6 : vector<128x128xf32>
    %cst_8 = arith.constant dense<0xFF800000> : vector<128xf32>
    %11 = vector.multi_reduction <maximumf>, %10, %cst_8 [0] : vector<128x128xf32> to vector<128xf32>
    %12 = vector.shape_cast %11 : vector<128xf32> to vector<1x128xf32>
    %13 = vector.broadcast %12 : vector<1x128xf32> to vector<128x128xf32>
    %14 = arith.subf %10, %13 : vector<128x128xf32>
    %15 = math.exp %14 : vector<128x128xf32>
    %cst_9 = arith.constant dense<0.000000e+00> : vector<128xf32>
    %16 = vector.multi_reduction <add>, %15, %cst_9 [0] : vector<128x128xf32> to vector<128xf32>
    %17 = vector.shape_cast %16 : vector<128xf32> to vector<1x128xf32>
    %18 = math.log %17 : vector<1x128xf32>
    %19 = arith.addf %12, %18 : vector<1x128xf32>
    %20 = arith.subf %9, %19 : vector<1x128xf32>
    %cst_10 = arith.constant 2.07944155 : f32
    %21 = vector.broadcast %cst_10 : f32 to vector<1x128xf32>
    %22 = arith.addf %20, %21 : vector<1x128xf32>
    %c0_11 = arith.constant 0 : index
    %c0_12 = arith.constant 0 : index
    %c0_13 = arith.constant 0 : index
    %23 = vector.load %arg4[%c0_11, %c0_12, %c0_13] : memref<1x1x128xf32, #tpu.memory_space<vmem>>, vector<1x1x128xf32>
    %24 = vector.shape_cast %23 : vector<1x1x128xf32> to vector<1x128xf32>
    %25 = vector.shape_cast %22 : vector<1x128xf32> to vector<1x1x128xf32>
    tpu.vector_store %arg4[%c0_11, %c0_12, %c0_13], %25 {strides = array<i32>} : memref<1x1x128xf32, #tpu.memory_space<vmem>>, vector<1x1x128xf32>,
    return
  }
  func.func @transform_0(%arg0: i32) -> (i32, i32, i32) {
    %c0_i32 = arith.constant 0 : i32
    %c0_i32_0 = arith.constant 0 : i32
    %c0_i32_1 = arith.constant 0 : i32
    return %arg0, %c0_i32, %c0_i32_0 : i32, i32, i32
  }
  func.func @transform_1(%arg0: i32) -> (i32, i32) {
    %c0_i32 = arith.constant 0 : i32
    %c0_i32_0 = arith.constant 0 : i32
    %c0_i32_1 = arith.constant 0 : i32
    return %c0_i32, %c0_i32_0 : i32, i32
  }
  func.func @transform_2(%arg0: i32) -> (i32, i32) {
    %c0_i32 = arith.constant 0 : i32
    %c0_i32_0 = arith.constant 0 : i32
    %c0_i32_1 = arith.constant 0 : i32
    return %c0_i32, %c0_i32_0 : i32, i32
  }
  func.func @transform_3(%arg0: i32) -> (i32, i32, i32) {
    %c0_i32 = arith.constant 0 : i32
    %c0_i32_0 = arith.constant 0 : i32
    %c0_i32_1 = arith.constant 0 : i32
    return %arg0, %c0_i32, %c0_i32_0 : i32, i32, i32
  }
}

</mosaic_0001>

<bundles_post_ra>
// kernel: tpu_custom_call.1
= control target key start
LH: loop header
LB: loop body
LE: loop exit
PB: predicated region body
PF: predicated region fallthrough
CT: control target
= control target key end

     0   :  { %8 = vsyncpa [#allocation3], 0  ;;  %s1051_s0 = inlined_call_operand.vmem [shape: f32[1,128,32], index: 0, kind: input, shape index: {}]   ;;  %s1052_s1 = inlined_call_operand.vmem [shape: f32[128,128], index: 1, kind: input, shape index: {}]   ;;  %s1053_s2 = inlined_call_operand.hbm [shape: f32[128,128], index: 2, kind: input, shape index: {}]   ;;  %s1054_s3 = inlined_call_operand.hbm [shape: f32[1,1,128], index: 3, kind: output, shape index: {}]  }
   0x1   :  { %9 = vsyncpa [#allocation4], 0  ;;  %s685_s12 = smov [#allocation2]  }
   0x2   :  { %s19_s13 = sshll.u32 %s685_s12, 4  ;;  %s20_s13 = int_to_ptr.vmem [resolvable:$true] %s19_s13 }
   0x3   :  { %s649_s14 = scalar_lea.vmem %s20_s13, 2048  ;;  %p654_p1 = scmp.lt.s32.totalorder %s20_s13, %s20_s13 }
   0x4   :  { %p650_p0 = scmp.ne.s32.totalorder %s20_s13, %s649_s14  ;;  %p655_p2 = scmp.lt.s32.totalorder %s649_s14, %s649_s14 }
   0x6   :  { %p656_p3 = por %p655_p2, %p654_p1 }
   0x8   :  { %p657_p4 = pnand %p656_p3, %p650_p0 }
   0xa   :  { %660 = shalt.err (!%p657_p4)
}
   0xb   :  { %s686_s15 = smov 128   ;;  %s687_s16 = smov 8  }
   0xc   :  { %25 = dma.hbm_to_vmem [thread:$0]  %s1053_s2, 2048, %s20_s13, [#allocation3], %s686_s15, %s686_s15, %s687_s16  }
   0xd   :  { %681 = dma.done.wait [#allocation3], 2048  }
   0xe   :  { %682 = vsyncadd [#allocation3], 4294965248  ;;  %v44_v0 = vld [vmem:[%s1051_s0 + $0x78] sm:$0xff]  ;;  %vm61_vm0 = vcmask 261120   ;;  %v43_v1 = vld [vmem:[%s1051_s0 + $0x70] sm:$0xff] }
   0xf   :  { %v718_v2 = vmul.f32 4.472136, %v44_v0  ;;  %v720_v3 = vmul.f32 4.472136, %v43_v1  ;;  %v42_v4 = vld [vmem:[%s1051_s0 + $0x68] sm:$0xff]  ;;  %v37_v5 = vld [vmem:[%s1051_s0 + $0x40] sm:$0xff] }
  0x10   :  { %v740_v6 = vmul.f32 4.472136, %v42_v4  ;;  %v53_v7 = vmul.f32 4.472136, %v37_v5  ;;  %v41_v8 = vld [vmem:[%s1051_s0 + $0x60] sm:$0xff]  ;;  %v40_v10 = vld [vmem:[%s1051_s0 + $0x58] sm:$0xff] }
  0x11   :  { %515 = vmatprep.subr.msk.mxu0 %vm61_vm0, %v718_v2  ;;  %571 = vmatprep.subr.msk.mxu1 %vm61_vm0, %v718_v2  ;;  %v754_v9 = vmul.f32 4.472136, %v41_v8  ;;  %v29_v11 = vld [vmem:[%s1051_s0] sm:$0xff]  ;;  %v772_v13 = vmul.f32 4.472136, %v40_v10  ;;  %v39_v14 = vld [vmem:[%s1051_s0 + $0x50] sm:$0xff] }
  0x12   :  { %516 = vmatpush3.xpose.msk.msra.mxu0 %vm61_vm0, %v718_v2  ;;  %587 = vmatpush3.xpose.msk.msra.mxu1 %vm61_vm0, %v718_v2  ;;  %v766_v12 = vmul.f32 4.472136, %v29_v11  ;;  %v787_v15 = vmul.f32 4.472136, %v39_v14  ;;  %v38_v16 = vld [vmem:[%s1051_s0 + $0x48] sm:$0xff]  ;;  %v36_v18 = vld [vmem:[%s1051_s0 + $0x38] sm:$0xff] }
  0x13   :  { %517 = vmatprep.subr.msk.mxu0 %vm61_vm0, %v720_v3  ;;  %572 = vmatprep.subr.msk.mxu1 %vm61_vm0, %v720_v3  ;;  %v54_v17 = vmul.f32 4.472136, %v38_v16  ;;  %v52_v19 = vmul.f32 4.472136, %v36_v18  ;;  %v35_v20 = vld [vmem:[%s1051_s0 + $0x30] sm:$0xff]  ;;  %v34_v22 = vld [vmem:[%s1051_s0 + $0x28] sm:$0xff] }
  0x14   :  { %559 = vmatprep.mubr.msk.f32.mxu1 %vm61_vm0, %v53_v7  ;;  %547 = vmatprep.mubr.msk.f32.mxu0 %vm61_vm0, %v766_v12  ;;  %v51_v21 = vmul.f32 4.472136, %v35_v20  ;;  %v50_v23 = vmul.f32 4.472136, %v34_v22  ;;  %v33_v24 = vld [vmem:[%s1051_s0 + $0x20] sm:$0xff]  ;;  %v32_v26 = vld [vmem:[%s1051_s0 + $0x18] sm:$0xff] }
  0x15   :  { %v49_v25 = vmul.f32 4.472136, %v33_v24  ;;  %v48_v27 = vmul.f32 4.472136, %v32_v26  ;;  %v31_v28 = vld [vmem:[%s1051_s0 + $0x10] sm:$0xff]  ;;  %v30_v30 = vld [vmem:[%s1051_s0 + $0x8] sm:$0xff] }
  0x16   :  { %518 = vmatpush3.xpose.msk.msra.mxu0 %vm61_vm0, %v720_v3  ;;  %588 = vmatpush3.xpose.msk.msra.mxu1 %vm61_vm0, %v720_v3  ;;  %v47_v29 = vmul.f32 4.472136, %v31_v28  ;;  %v46_v31 = vmul.f32 4.472136, %v30_v30  ;;  %v256_v33 = vld [vmem:[%s1052_s1 + $0x8] sm:$0xff]  ;;  %v255_v34 = vld [vmem:[%s1052_s1] sm:$0xff] }
  0x17   :  { %519 = vmatprep.subr.msk.mxu0 %vm61_vm0, %v740_v6  ;;  %573 = vmatprep.subr.msk.mxu1 %vm61_vm0, %v740_v6  ;;  %v257_v41 = vld [vmem:[%s1052_s1 + $0x10] sm:$0xff]  ;;  %v258_v44 = vld [vmem:[%s1052_s1 + $0x18] sm:$0xff]  ;;  %v276_v48 = vld [vmem:[#allocation2 + $0x28] sm:$0xff] }
  0x18   :  { %v271_v49 = vld [vmem:[#allocation2] sm:$0xff]  ;;  %v272_v54 = vld [vmem:[#allocation2 + $0x8] sm:$0xff]  ;;  %v274_v63 = vld [vmem:[#allocation2 + $0x18] sm:$0xff] }
  0x19   :  { %v259_v51 = vld [vmem:[%s1052_s1 + $0x20] sm:$0xff]  ;;  %v280_v57 = vld [vmem:[#allocation2 + $0x48] sm:$0xff]  ;;  %v278_v4 = vld [vmem:[#allocation2 + $0x38] sm:$0xff] }
  0x1a   :  { %520 = vmatpush3.xpose.msk.msra.mxu0 %vm61_vm0, %v740_v6  ;;  %589 = vmatpush3.xpose.msk.msra.mxu1 %vm61_vm0, %v740_v6  ;;  %v275_v52 = vld [vmem:[#allocation2 + $0x20] sm:$0xff]  ;;  %v260_v58 = vld [vmem:[%s1052_s1 + $0x28] sm:$0xff] }
  0x1b   :  { %521 = vmatprep.subr.msk.mxu0 %vm61_vm0, %v754_v9  ;;  %574 = vmatprep.subr.msk.mxu1 %vm61_vm0, %v754_v9  ;;  %v279_v0 = vld [vmem:[#allocation2 + $0x40] sm:$0xff]  ;;  %v284_v20 = vld [vmem:[#allocation2 + $0x68] sm:$0xff] }
  0x1c   :  { %v263_v30 = vld [vmem:[%s1052_s1 + $0x40] sm:$0xff] }
  0x1e   :  { %522 = vmatpush3.xpose.msk.msra.mxu0 %vm61_vm0, %v754_v9  ;;  %590 = vmatpush3.xpose.msk.msra.mxu1 %vm61_vm0, %v754_v9 }
  0x1f   :  { %523 = vmatprep.subr.msk.mxu0 %vm61_vm0, %v772_v13  ;;  %575 = vmatprep.subr.msk.mxu1 %vm61_vm0, %v772_v13 }
  0x22   :  { %524 = vmatpush3.xpose.msk.msra.mxu0 %vm61_vm0, %v772_v13  ;;  %591 = vmatpush3.xpose.msk.msra.mxu1 %vm61_vm0, %v772_v13 }
  0x23   :  { %525 = vmatprep.subr.msk.mxu0 %vm61_vm0, %v787_v15  ;;  %576 = vmatprep.subr.msk.mxu1 %vm61_vm0, %v787_v15 }
  0x26   :  { %526 = vmatpush3.xpose.msk.msra.mxu0 %vm61_vm0, %v787_v15  ;;  %592 = vmatpush3.xpose.msk.msra.mxu1 %vm61_vm0, %v787_v15 }
  0x27   :  { %527 = vmatprep.subr.msk.mxu0 %vm61_vm0, %v54_v17  ;;  %577 = vmatprep.subr.msk.mxu1 %vm61_vm0, %v54_v17 }
  0x2a   :  { %528 = vmatpush3.xpose.msk.msra.mxu0 %vm61_vm0, %v54_v17  ;;  %593 = vmatpush3.xpose.msk.msra.mxu1 %vm61_vm0, %v54_v17 }
  0x2b   :  { %529 = vmatprep.subr.msk.mxu0 %vm61_vm0, %v53_v7  ;;  %578 = vmatprep.subr.msk.mxu1 %vm61_vm0, %v53_v7 }
  0x2e   :  { %530 = vmatpush3.xpose.msk.msra.mxu0 %vm61_vm0, %v53_v7  ;;  %594 = vmatpush3.xpose.msk.msra.mxu1 %vm61_vm0, %v53_v7  ;;  %v282_v7 = vld [vmem:[#allocation2 + $0x58] sm:$0xff] }
  0x2f   :  { %531 = vmatprep.subr.msk.mxu0 %vm61_vm0, %v52_v19  ;;  %579 = vmatprep.subr.msk.mxu1 %vm61_vm0, %v52_v19 }
  0x32   :  { %532 = vmatpush3.xpose.msk.msra.mxu0 %vm61_vm0, %v52_v19  ;;  %595 = vmatpush3.xpose.msk.msra.mxu1 %vm61_vm0, %v52_v19 }
  0x33   :  { %533 = vmatprep.subr.msk.mxu0 %vm61_vm0, %v51_v21  ;;  %580 = vmatprep.subr.msk.mxu1 %vm61_vm0, %v51_v21 }
  0x36   :  { %534 = vmatpush3.xpose.msk.msra.mxu0 %vm61_vm0, %v51_v21  ;;  %596 = vmatpush3.xpose.msk.msra.mxu1 %vm61_vm0, %v51_v21 }
  0x37   :  { %535 = vmatprep.subr.msk.mxu0 %vm61_vm0, %v50_v23  ;;  %581 = vmatprep.subr.msk.mxu1 %vm61_vm0, %v50_v23 }
  0x3a   :  { %536 = vmatpush3.xpose.msk.msra.mxu0 %vm61_vm0, %v50_v23  ;;  %597 = vmatpush3.xpose.msk.msra.mxu1 %vm61_vm0, %v50_v23 }
  0x3b   :  { %537 = vmatprep.subr.msk.mxu0 %vm61_vm0, %v49_v25  ;;  %582 = vmatprep.subr.msk.mxu1 %vm61_vm0, %v49_v25 }
  0x3e   :  { %538 = vmatpush3.xpose.msk.msra.mxu0 %vm61_vm0, %v49_v25  ;;  %598 = vmatpush3.xpose.msk.msra.mxu1 %vm61_vm0, %v49_v25 }
  0x3f   :  { %539 = vmatprep.subr.msk.mxu0 %vm61_vm0, %v48_v27  ;;  %583 = vmatprep.subr.msk.mxu1 %vm61_vm0, %v48_v27 }
  0x42   :  { %540 = vmatpush3.xpose.msk.msra.mxu0 %vm61_vm0, %v48_v27  ;;  %599 = vmatpush3.xpose.msk.msra.mxu1 %vm61_vm0, %v48_v27 }
  0x43   :  { %541 = vmatprep.subr.msk.mxu0 %vm61_vm0, %v47_v29  ;;  %584 = vmatprep.subr.msk.mxu1 %vm61_vm0, %v47_v29 }
  0x46   :  { %542 = vmatpush3.xpose.msk.msra.mxu0 %vm61_vm0, %v47_v29  ;;  %600 = vmatpush3.xpose.msk.msra.mxu1 %vm61_vm0, %v47_v29 }
  0x47   :  { %543 = vmatprep.subr.msk.mxu0 %vm61_vm0, %v46_v31  ;;  %585 = vmatprep.subr.msk.mxu1 %vm61_vm0, %v46_v31 }
  0x4a   :  { %544 = vmatpush3.xpose.msk.msra.mxu0 %vm61_vm0, %v46_v31  ;;  %601 = vmatpush3.xpose.msk.msra.mxu1 %vm61_vm0, %v46_v31 }
  0x4b   :  { %545 = vmatprep.subr.msk.mxu0 %vm61_vm0, %v766_v12  ;;  %586 = vmatprep.subr.msk.mxu1 %vm61_vm0, %v766_v12 }
  0x4e   :  { %546 = vmatpush3.xpose.msk.msra.mxu0 %vm61_vm0, %v766_v12  ;;  %602 = vmatpush3.xpose.msk.msra.mxu1 %vm61_vm0, %v766_v12  ;;  %v281_v12 = vld [vmem:[#allocation2 + $0x50] sm:$0xff] }
  0x51   :  { %548 = vmatmul.mubr.msk.f32.vlgmr.msra.gmra.mxu0 %vm61_vm0, %v46_v31  ;;  %560 = vmatmul.mubr.msk.f32.vlgmr.msra.gmra.mxu1 %vm61_vm0, %v54_v17 }
  0x52   :  { %550 = vmatprep.mubr.msk.f32.mxu0 %vm61_vm0, %v47_v29  ;;  %562 = vmatprep.mubr.msk.f32.mxu1 %vm61_vm0, %v787_v15  ;;  %v277_v15 = vld [vmem:[#allocation2 + $0x30] sm:$0xff]  ;;  %v286_v29 = vld [vmem:[#allocation2 + $0x78] sm:$0xff] }
  0x55   :  { %551 = vmatmul.mubr.msk.f32.gmra.mxu0 %vm61_vm0, %v48_v27  ;;  %563 = vmatmul.mubr.msk.f32.gmra.mxu1 %vm61_vm0, %v772_v13 }
  0x56   :  { %553 = vmatprep.mubr.msk.f32.mxu0 %vm61_vm0, %v49_v25  ;;  %565 = vmatprep.mubr.msk.f32.mxu1 %vm61_vm0, %v754_v9  ;;  %v261_v9 = vld [vmem:[%s1052_s1 + $0x30] sm:$0xff] }
  0x59   :  { %554 = vmatmul.mubr.msk.f32.gmra.mxu0 %vm61_vm0, %v50_v23  ;;  %566 = vmatmul.mubr.msk.f32.gmra.mxu1 %vm61_vm0, %v740_v6  ;;  %v273_v6 = vld [vmem:[#allocation2 + $0x10] sm:$0xff]  ;;  %v283_v23 = vld [vmem:[#allocation2 + $0x60] sm:$0xff] }
  0x5a   :  { %556 = vmatprep.mubr.msk.f32.mxu0 %vm61_vm0, %v51_v21  ;;  %568 = vmatprep.mubr.msk.f32.mxu1 %vm61_vm0, %v720_v3  ;;  %v262_v21 = vld [vmem:[%s1052_s1 + $0x38] sm:$0xff] }
  0x5d   :  { %557 = vmatmul.mubr.msk.f32.gmra.mxu0 %vm61_vm0, %v52_v19  ;;  %569 = vmatmul.mubr.msk.f32.gmra.mxu1 %vm61_vm0, %v718_v2 }
 0x111   :  { %v549_v32 = vpop.f32.mrf.mxu0  ;;  %v895_v35 = vpop.f32.mrf.mxu1 }
 0x112   :  { %v288_v38 = vmul.f32 %v549_v32, %v256_v33  ;;  %v925_v5 = vadd.f32 %v549_v32, %v272_v54  ;;  %v931_v10 = vadd.f32 %v895_v35, %v280_v57 }
 0x113   :  { %v176_v36 = vpop.f32.mrf.mxu0  ;;  %v897_v37 = vpop.f32.mrf.mxu1 }
 0x114   :  { %v287_v39 = vmul.f32 %v255_v34, %v176_v36  ;;  %v921_v62 = vadd.f32 %v271_v49, %v176_v36  ;;  %v938_v18 = vadd.f32 %v279_v0, %v897_v37 }
 0x115   :  { %v552_v40 = vpop.f32.mrf.mxu0  ;;  %v902_v42 = vpop.f32.mrf.mxu1 }
 0x116   :  { %v303_v43 = vadd.f32 %v288_v38, %v287_v39  ;;  %v290_v55 = vmul.f32 %v552_v40, %v258_v44  ;;  %v935_v17 = vadd.f32 %v552_v40, %v274_v63  ;;  %v950_v26 = vadd.f32 %v902_v42, %v282_v7  ;;  %v264_v44 = vld [vmem:[%s1052_s1 + $0x48] sm:$0xff] }
 0x117   :  { %v186_v45 = vpop.f32.mrf.mxu0  ;;  %v907_v46 = vpop.f32.mrf.mxu1  ;;  %v296_v57 = vmul.f32 %v895_v35, %v264_v44 }
 0x118   :  { %v289_v47 = vmul.f32 %v257_v41, %v186_v45  ;;  %v947_v25 = vadd.f32 %v273_v6, %v186_v45  ;;  %v956_v31 = vadd.f32 %v281_v12, %v907_v46 }
 0x119   :  { %v555_v50 = vpop.f32.mrf.mxu0  ;;  %v912_v53 = vpop.f32.mrf.mxu1 }
 0x11a   :  { %v304_v56 = vadd.f32 %v303_v43, %v289_v47  ;;  %v917_v59 = vadd.f32 %v555_v50, %v276_v48  ;;  %v292_v11 = vmul.f32 %v555_v50, %v260_v58  ;;  %v964_v36 = vadd.f32 %v912_v53, %v284_v20  ;;  %v285_v43 = vld [vmem:[#allocation2 + $0x70] sm:$0xff] }
 0x11b   :  { %v196_v60 = vpop.f32.mrf.mxu0  ;;  %v919_v61 = vpop.f32.mrf.mxu1  ;;  %v295_v50 = vmul.f32 %v263_v30, %v897_v37 }
 0x11c   :  { %v291_v1 = vmul.f32 %v259_v51, %v196_v60  ;;  %v305_v2 = vadd.f32 %v304_v56, %v290_v55  ;;  %v923_v3 = vadd.f32 %v275_v52, %v196_v60  ;;  %v341_v19 = vmax.f32 %v925_v5, %v917_v59  ;;  %v265_v52 = vld [vmem:[%s1052_s1 + $0x50] sm:$0xff]  ;;  %v266_v60 = vld [vmem:[%s1052_s1 + $0x58] sm:$0xff] }
 0x11d   :  { %v558_v8 = vpop.f32.mrf.mxu0  ;;  %v570_v16 = vpop.f32.mrf.mxu1  ;;  %v967_v39 = vadd.f32 %v283_v23, %v919_v61  ;;  %v298_v7 = vmul.f32 %v902_v42, %v266_v60  ;;  %v270_v42 = vld [vmem:[%s1052_s1 + $0x78] sm:$0xff] }
 0x11e   :  { %v306_v13 = vadd.f32 %v305_v2, %v291_v1  ;;  %v340_v14 = vmax.f32 %v921_v62, %v923_v3  ;;  %v945_v22 = vadd.f32 %v558_v8, %v278_v4  ;;  %v294_v38 = vmul.f32 %v558_v8, %v262_v21  ;;  %v267_v4 = vld [vmem:[%s1052_s1 + $0x60] sm:$0xff] }
 0x11f   :  { %v206_v24 = vpop.f32.mrf.mxu0  ;;  %v246_v41 = vpop.f32.mrf.mxu1  ;;  %v345_v45 = vmax.f32 %v341_v19, %v931_v10  ;;  %v975_v48 = vadd.f32 %v570_v16, %v286_v29  ;;  %v297_v1 = vmul.f32 %v265_v52, %v907_v46  ;;  %v299_v12 = vmul.f32 %v267_v4, %v919_v61  ;;  %v269_v46 = vld [vmem:[%s1052_s1 + $0x70] sm:$0xff] }
 0x120   :  { %v293_v27 = vmul.f32 %v261_v9, %v206_v24  ;;  %v307_v28 = vadd.f32 %v306_v13, %v292_v11  ;;  %v343_v32 = vmax.f32 %v935_v17, %v945_v22  ;;  %v344_v33 = vmax.f32 %v340_v14, %v938_v18  ;;  %v268_v9 = vld [vmem:[%s1052_s1 + $0x68] sm:$0xff]  ;;  %s688_s1 = smov [#allocation5]  }
 0x121   :  { %v961_v34 = vadd.f32 %v277_v15, %v206_v24  ;;  %v983_v55 = vadd.f32 %v285_v43, %v246_v41  ;;  %v349_v37 = vmax.f32 %v345_v45, %v964_v36  ;;  %v300_v15 = vmul.f32 %v912_v53, %v268_v9  ;;  %s442_s2 = sshll.u32 %s688_s1, 4  ;;  %s443_s2 = int_to_ptr.vmem [resolvable:$true] %s442_s2 }
 0x122   :  { %v308_v40 = vadd.f32 %v307_v28, %v293_v27  ;;  %v347_v49 = vmax.f32 %v343_v32, %v950_v26  ;;  %v348_v54 = vmax.f32 %v344_v33, %v967_v39  ;;  %v301_v21 = vmul.f32 %v269_v46, %v246_v41  ;;  %s661_s25 = scalar_lea.vmem %s443_s2, 16  ;;  %s665_s26 = scalar_lea.vmem %s443_s2, 32 }
 0x123   :  { %v342_v47 = vmax.f32 %v947_v25, %v961_v34  ;;  %v302_v27 = vmul.f32 %v570_v16, %v270_v42  ;;  %p662_p5 = scmp.ne.s32.totalorder %s443_s2, %s661_s25  ;;  %p666_p6 = scmp.lt.s32.totalorder %s443_s2, %s443_s2 }
 0x124   :  { %v309_v51 = vadd.f32 %v308_v40, %v294_v38  ;;  %v351_v63 = vmax.f32 %v347_v49, %v975_v48  ;;  %v352_v6 = vmax.f32 %v348_v54, %v349_v37  ;;  %p667_p7 = scmp.lt.s32.totalorder %s665_s26, %s661_s25 }
 0x125   :  { %v346_v56 = vmax.f32 %v342_v47, %v956_v31 }
 0x126   :  { %v310_v58 = vadd.f32 %v309_v51, %v295_v50  ;;  %p668_p8 = por %p667_p7, %p666_p6 }
 0x127   :  { %v350_v0 = vmax.f32 %v346_v56, %v983_v55 }
 0x128   :  { %v311_v2 = vadd.f32 %v310_v58, %v296_v57  ;;  %p669_p9 = pnand %p668_p8, %p662_p5 }
 0x129   :  { %v353_v35 = vmax.f32 %v350_v0, %v351_v63 }
 0x12a   :  { %v312_v8 = vadd.f32 %v311_v2, %v297_v1 }
 0x12b   :  { %v354_v11 = vmax.f32 %v352_v6, %v353_v35 }
 0x12c   :  { %v313_v13 = vadd.f32 %v312_v8, %v298_v7 }
 0x12d   :  { %v355_v14 = vrot.slane %v354_v11, 4 }
 0x12e   :  { %v314_v19 = vadd.f32 %v313_v13, %v299_v12 }
 0x12f   :  { %v356_v20 = vmax.f32 %v354_v11, %v355_v14 }
 0x130   :  { %v315_v23 = vadd.f32 %v314_v19, %v300_v15 }
 0x131   :  { %v357_v24 = vrot.slane %v356_v20, 2 }
 0x132   :  { %v316_v28 = vadd.f32 %v315_v23, %v301_v21 }
 0x133   :  { %v358_v61 = vmax.f32 %v356_v20, %v357_v24 }
 0x134   :  { %v1009_v29 = vadd.f32 %v316_v28, %v302_v27 }
 0x135   :  { %v359_v30 = vrot.slane %v358_v61, 1 }
 0x137   :  { %v1011_v32 = vmax.f32 %v358_v61, %v359_v30 }
 0x139   :  { %v361_v53 = vsub.f32 %v921_v62, %v1011_v32  ;;  %v362_v33 = vsub.f32 %v925_v5, %v1011_v32  ;;  %v363_v38 = vsub.f32 %v947_v25, %v1011_v32  ;;  %v364_v40 = vsub.f32 %v935_v17, %v1011_v32 }
 0x13a   :  { %v365_v43 = vsub.f32 %v923_v3, %v1011_v32  ;;  %v366_v45 = vsub.f32 %v917_v59, %v1011_v32  ;;  %v367_v5 = vsub.f32 %v961_v34, %v1011_v32  ;;  %v368_v17 = vsub.f32 %v945_v22, %v1011_v32 }
 0x13b   :  { %v377_v16 = vmul.f32 1.442695, %v361_v53  ;;  %v379_v41 = vmul.f32 1.442695, %v362_v33  ;;  %v381_v44 = vmul.f32 1.442695, %v363_v38  ;;  %v369_v3 = vsub.f32 %v938_v18, %v1011_v32 }
 0x13c   :  { %v383_v62 = vmul.f32 1.442695, %v364_v40  ;;  %v385_v25 = vmul.f32 1.442695, %v365_v43  ;;  %v387_v47 = vmul.f32 1.442695, %v366_v45  ;;  %v370_v59 = vsub.f32 %v931_v10, %v1011_v32 }
 0x13d   :  { %607 = vpow2.f32 %v377_v16  ;;  %v389_v49 = vmul.f32 1.442695, %v367_v5  ;;  %v391_v50 = vmul.f32 1.442695, %v368_v17  ;;  %v371_v34 = vsub.f32 %v956_v31, %v1011_v32 }
 0x13e   :  { %609 = vpow2.f32 %v379_v41  ;;  %v393_v51 = vmul.f32 1.442695, %v369_v3  ;;  %v372_v22 = vsub.f32 %v950_v26, %v1011_v32  ;;  %v395_v54 = vmul.f32 1.442695, %v370_v59 }
 0x13f   :  { %611 = vpow2.f32 %v381_v44  ;;  %v373_v18 = vsub.f32 %v967_v39, %v1011_v32  ;;  %v397_v57 = vmul.f32 1.442695, %v371_v34  ;;  %v374_v60 = vsub.f32 %v964_v36, %v1011_v32 }
 0x140   :  { %613 = vpow2.f32 %v383_v62  ;;  %v399_v31 = vmul.f32 1.442695, %v372_v22  ;;  %v375_v26 = vsub.f32 %v983_v55, %v1011_v32  ;;  %v376_v6 = vsub.f32 %v975_v48, %v1011_v32 }
 0x141   :  { %615 = vpow2.f32 %v385_v25  ;;  %v401_v0 = vmul.f32 1.442695, %v373_v18  ;;  %v403_v39 = vmul.f32 1.442695, %v374_v60  ;;  %v318_v41 = vrot.slane %v1009_v29, 4 }
 0x142   :  { %617 = vpow2.f32 %v387_v47  ;;  %v405_v36 = vmul.f32 1.442695, %v375_v26  ;;  %v407_v11 = vmul.f32 1.442695, %v376_v6 }
 0x143   :  { %619 = vpow2.f32 %v389_v49  ;;  %v319_v45 = vadd.f32 %v318_v41, %v1009_v29 }
 0x144   :  { %621 = vpow2.f32 %v391_v50 }
 0x145   :  { %623 = vpow2.f32 %v393_v51  ;;  %v320_v62 = vrot.slane %v319_v45, 2 }
 0x146   :  { %625 = vpow2.f32 %v395_v54 }
 0x147   :  { %627 = vpow2.f32 %v397_v57  ;;  %v321_v5 = vadd.f32 %v320_v62, %v319_v45 }
 0x148   :  { %629 = vpow2.f32 %v399_v31 }
 0x149   :  { %631 = vpow2.f32 %v401_v0  ;;  %v322_v25 = vrot.slane %v321_v5, 1 }
 0x14a   :  { %v608_v52 = vpop.eup %607  ;;  %633 = vpow2.f32 %v403_v39 }
 0x14b   :  { %v610_v56 = vpop.eup %609  ;;  %635 = vpow2.f32 %v405_v36  ;;  %v323_v3 = vadd.f32 %v322_v25, %v321_v5 }
 0x14c   :  { %v409_v10 = vadd.f32 %v610_v56, %v608_v52  ;;  %v612_v58 = vpop.eup %611  ;;  %637 = vpow2.f32 %v407_v11 }
 0x14d   :  { %v614_v63 = vpop.eup %613 }
 0x14e   :  { %v410_v37 = vadd.f32 %v612_v58, %v409_v10  ;;  %v616_v2 = vpop.eup %615 }
 0x14f   :  { %v618_v35 = vpop.eup %617 }
 0x150   :  { %v411_v1 = vadd.f32 %v614_v63, %v410_v37  ;;  %v620_v8 = vpop.eup %619 }
 0x151   :  { %v622_v12 = vpop.eup %621 }
 0x152   :  { %v412_v4 = vadd.f32 %v616_v2, %v411_v1  ;;  %v624_v13 = vpop.eup %623 }
 0x153   :  { %v626_v14 = vpop.eup %625 }
 0x154   :  { %v413_v7 = vadd.f32 %v618_v35, %v412_v4  ;;  %v628_v19 = vpop.eup %627 }
 0x155   :  { %v630_v20 = vpop.eup %629 }
 0x156   :  { %v414_v9 = vadd.f32 %v620_v8, %v413_v7  ;;  %v632_v21 = vpop.eup %631 }
 0x157   :  { %v634_v24 = vpop.eup %633 }
 0x158   :  { %v415_v55 = vadd.f32 %v622_v12, %v414_v9  ;;  %v636_v28 = vpop.eup %635 }
 0x159   :  { %v638_v30 = vpop.eup %637 }
 0x15a   :  { %v416_v46 = vadd.f32 %v624_v13, %v415_v55 }
 0x15c   :  { %v417_v15 = vadd.f32 %v626_v14, %v416_v46 }
 0x15e   :  { %v418_v42 = vadd.f32 %v628_v19, %v417_v15 }
 0x160   :  { %v419_v48 = vadd.f32 %v630_v20, %v418_v42 }
 0x162   :  { %v420_v23 = vadd.f32 %v632_v21, %v419_v48 }
 0x164   :  { %v421_v27 = vadd.f32 %v634_v24, %v420_v23 }
 0x166   :  { %v422_v61 = vadd.f32 %v636_v28, %v421_v27 }
 0x168   :  { %v423_v53 = vadd.f32 %v638_v30, %v422_v61 }
 0x16a   :  { %v424_v33 = vrot.slane %v423_v53, 4 }
 0x16c   :  { %v425_v38 = vadd.f32 %v424_v33, %v423_v53 }
 0x16e   :  { %v426_v40 = vrot.slane %v425_v38, 2 }
 0x170   :  { %v427_v16 = vadd.f32 %v426_v40, %v425_v38 }
 0x172   :  { %v428_v43 = vrot.slane %v427_v16, 1 }
 0x174   :  { %v429_v44 = vadd.f32 %v428_v43, %v427_v16 }
 0x176   :  { %639 = vlog2.f32 %v429_v44 }
 0x183   :  { %v640_v17 = vpop.eup %639 }
 0x184   :  { %v431_v47 = vmul.f32 0.6931472, %v640_v17 }
 0x186   :  { %v432_v49 = vadd.f32 %v431_v47, %v1011_v32 }
 0x188   :  { %v433_v59 = vsub.f32 %v323_v3, %v432_v49 }
 0x18a   :  { %v434_v50 = vadd.f32 2.0794415, %v433_v59 }
 0x18c   :  { %435 = vst [vmem:[#allocation5] sm:$0x1] %v434_v50 }
 0x18d   :  { %672 = shalt.err (!%p669_p9)
}
 0x18e   :  { %445 = dma.vmem_to_hbm [thread:$0]  %s443_s2, 16, %s1054_s3, [#allocation4]  }
 0x18f   :  { %683 = dma.done.wait [#allocation4], 16  }
 0x190   :  { %684 = vsyncadd [#allocation4], 4294967280 }
 0x191   :  { %449 = vsyncpa [#allocation3], 1 }
 0x192   :  { %450 = vsyncpa [#allocation4], 1 }

</bundles_post_ra>
